<compile_context>
chip_gen: v7x
topology: tpu7x:2x2x1
jax: 0.10.0
libtpu: 0.0.40
codegen_flags: <defaults>
</compile_context>

<pallas_src>
import functools

import jax
import jax.numpy as jnp
from jax.experimental import pallas as pl
from jax.experimental.pallas import tpu as pltpu


# ----------------------------------------------------------------------------
# Kernels
# ----------------------------------------------------------------------------
def _write_padded(o_ref, core, pad):
    """Write `core` into the channel-zero-padded output tile, each element once."""
    b, c_in, tl = core.shape
    if pad == 0:
        o_ref[...] = core
        return
    zeros = jnp.zeros((b, pad, tl), o_ref.dtype)
    # TODO(synk): when pad % 8 != 0 a single concatenated full-tile store would
    # avoid sublane-misaligned masked stores; low priority (store slots never
    # bind for this HBM-bound kernel).
    o_ref[:, 0:pad, :] = zeros
    o_ref[:, pad:pad + c_in, :] = core
    o_ref[:, pad + c_in:pad + c_in + pad, :] = zeros


def _shortcut_fused_kernel(x_ref, o_ref, *, pad):
    # x_ref: (B, C, 2*TL or L)   dense input tile (contiguous HBM DMA to VMEM)
    # o_ref: (B, C + 2*pad, TL)  output tile
    # Stride-2 selection happens on-chip, hidden under the HBM DMA.
    x_even = x_ref[...][:, :, ::2].astype(o_ref.dtype)
    _write_padded(o_ref, x_even, pad)


def _shortcut_pad_kernel(x_ref, o_ref, *, pad):
    # x_ref: (B, C, TL) already stride-2 downsampled (by XLA); o_ref as above.
    _write_padded(o_ref, x_ref[...].astype(o_ref.dtype), pad)


# ----------------------------------------------------------------------------
# Capability probe: does a lane-axis stride-2 slice lower on this Mosaic?
# ----------------------------------------------------------------------------
_LANE_STRIDED_SLICE_OK = None


def _lane_strided_slice_supported():
    global _LANE_STRIDED_SLICE_OK
    if _LANE_STRIDED_SLICE_OK is None:
        def probe(x_ref, o_ref):
            o_ref[...] = x_ref[...][:, :, ::2]

        try:
            x = jnp.arange(1 * 8 * 256, dtype=jnp.float32).reshape(1, 8, 256)
            out = pl.pallas_call(
                probe,
                out_shape=jax.ShapeDtypeStruct((1, 8, 128), jnp.float32),
            )(x)
            out = jax.block_until_ready(out)
            _LANE_STRIDED_SLICE_OK = bool(jnp.array_equal(out, x[:, :, ::2]))
        except Exception:
            _LANE_STRIDED_SLICE_OK = False
    return _LANE_STRIDED_SLICE_OK


# ----------------------------------------------------------------------------
# Tile sizing helpers
# ----------------------------------------------------------------------------
def _round_up(v, m):
    return -(-v // m) * m


def _per_tile_byte_target():
    """Bytes of (input + output) per tile; double-buffering uses ~2x this."""
    try:
        cap = int(getattr(pltpu.get_tpu_info(), "vmem_capacity_bytes", 0) or 0)
    except Exception:
        cap = 0
    if cap > 0:
        # ~24 MiB double-buffered on 128 MiB parts (v5e/v6e),
        # ~16 MiB on 64 MiB parts (v7x).
        return int(min(12 << 20, max(2 << 20, cap // 8)))
    return 8 << 20  # safe default for v7x's 64 MiB physical VMEM


# ----------------------------------------------------------------------------
# Wrapper
# ----------------------------------------------------------------------------
def lambda_shortcut_pallas(x, planes, *, tile_byte_target=None):
    """Pallas version of: F.pad(x[:, :, ::2], (0, 0, planes//4, planes//4))."""
    n, c, l = x.shape
    pad = planes // 4
    c_out = c + 2 * pad
    l_out = (l + 1) // 2
    itemsize = jnp.dtype(x.dtype).itemsize
    if tile_byte_target is None:
        tile_byte_target = _per_tile_byte_target()

    fused = _lane_strided_slice_supported()
    if not fused:
        # TODO(synk): lane-axis strided slice does not lower on this Mosaic
        # version; the stride-2 downsample is done by XLA and the Pallas kernel
        # keeps the dense pad/assemble.  Ideally the whole shortcut would be
        # fused into the consumer residual-add so the zero slabs never hit HBM.
        x = x[:, :, ::2]                                   # (n, c, l_out)
    in_per_lpos = (2 * c) if fused else c                  # in elems per out pos
    in_full_l = l if fused else l_out                      # full-length in extent

    # Tile selection: target `tile_byte_target` bytes of (in + out) per tile.
    per_b_full = (c * in_full_l + c_out * l_out) * itemsize
    if per_b_full >= tile_byte_target and l_out > 256:
        # Tile along length (one batch element per tile).
        b_tile = 1
        per_tl = (in_per_lpos + c_out) * itemsize
        tl = max(128, (tile_byte_target // per_tl) // 128 * 128)
        l_tiled = tl < l_out
        if not l_tiled:
            tl = l_out
    else:
        # Whole length per tile; tile over batch to amortize per-step overhead.
        b_tile = max(1, min(n, tile_byte_target // max(per_b_full, 1)))
        tl = l_out
        l_tiled = False

    n_b_tiles = pl.cdiv(n, b_tile)
    n_l_tiles = pl.cdiv(l_out, tl)

    # Give v7x's two TensorCores at least two programs when there is real work.
    if n_b_tiles * n_l_tiles == 1 and n * per_b_full >= (64 << 10):
        if n >= 2:
            b_tile = -(-n // 2)
            n_b_tiles = pl.cdiv(n, b_tile)
        elif l_out >= 256:
            tl = _round_up(-(-l_out // 2), 128)
            n_l_tiles = pl.cdiv(l_out, tl)
            l_tiled = n_l_tiles > 1

    in_l = (2 * tl if l_tiled else l) if fused else tl

    in_tile_bytes = b_tile * c * in_l * itemsize
    out_tile_bytes = b_tile * c_out * tl * itemsize
    vmem_limit = int(min(
        64 << 20,
        max(4 << 20, 2 * (in_tile_bytes + out_tile_bytes) + (2 << 20))))

    kernel = functools.partial(
        _shortcut_fused_kernel if fused else _shortcut_pad_kernel, pad=pad)

    cost = pl.CostEstimate(
        flops=0,
        transcendentals=0,
        bytes_accessed=n * c * in_full_l * itemsize
        + n * c_out * l_out * itemsize,
    )

    return pl.pallas_call(
        kernel,
        out_shape=jax.ShapeDtypeStruct((n, c_out, l_out), x.dtype),
        grid=(n_b_tiles, n_l_tiles),
        in_specs=[pl.BlockSpec((b_tile, c, in_l), lambda b, j: (b, 0, j))],
        out_specs=pl.BlockSpec((b_tile, c_out, tl), lambda b, j: (b, 0, j)),
        compiler_params=pltpu.CompilerParams(
            dimension_semantics=("parallel", "parallel"),
            vmem_limit_bytes=vmem_limit,
        ),
        cost_estimate=cost,
    )(x)


class LambdaLayer:
    """Faithful port of the PyTorch LambdaLayer: just applies `lambd`."""

    def __init__(self, lambd):
        self.lambd = lambd

    def __call__(self, x):
        return self.lambd(x)


def _reference(x, planes):
    pad = planes // 4
    return jnp.pad(x[:, :, ::2], ((0, 0), (pad, pad), (0, 0)))


if __name__ == "__main__":
    key = jax.random.PRNGKey(0)

    # 1) Small deterministic example matching typical module use:
    #    N=2, C=4, L=16, planes=8 -> pad=2 per side, output (2, 8, 8).
    x_small = jax.random.normal(key, (2, 4, 16), dtype=jnp.float32)
    planes_small = 8
    layer = LambdaLayer(lambda t: lambda_shortcut_pallas(t, planes_small))
    out_small = jax.block_until_ready(layer(x_small))
    ref_small = _reference(x_small, planes_small)
    assert out_small.shape == ref_small.shape, (out_small.shape, ref_small.shape)
    assert jnp.array_equal(out_small, ref_small), "small-shape mismatch"

    # 2) Batch-tiled whole-length path: N=5, C=16, L=5001 (odd), planes=64
    #    -> output (5, 48, 2501); exercises the >=2-program split and a ragged
    #    batch tile.
    x_mid = jax.random.normal(jax.random.PRNGKey(0), (5, 16, 5001),
                              dtype=jnp.float32)
    planes_mid = 64
    out_mid = jax.block_until_ready(lambda_shortcut_pallas(x_mid, planes_mid))
    ref_mid = _reference(x_mid, planes_mid)
    assert out_mid.shape == ref_mid.shape, (out_mid.shape, ref_mid.shape)
    assert jnp.array_equal(out_mid, ref_mid), "batch-tiled path mismatch"

    # 3) Length-tiled path (small explicit tile budget) with a ragged last
    #    length tile; same data, same reference.
    out_tiled = jax.block_until_ready(
        lambda_shortcut_pallas(x_mid, planes_mid, tile_byte_target=64 * 1024))
    assert jnp.array_equal(out_tiled, ref_mid), "length-tiled path mismatch"

    print("KERNEL_OK")
</pallas_src>

<mosaic_0001>
module attributes {stable_mosaic.version = 11 : i64} {
  func.func @_shortcut_pad_kernel(%arg0: i32, %arg1: i32, %arg2: memref<2x4x8xf32, #tpu.memory_space<vmem>>, %arg3: memref<2x8x8xf32, #tpu.memory_space<vmem>>) attributes {dimension_semantics = [#tpu.dimension_semantics<parallel>, #tpu.dimension_semantics<parallel>], iteration_bounds = array<i64: 1, 1>, scalar_prefetch = 0 : i64, scratch_operands = 0 : i64, tpu.core_type = #tpu.core_type<tc>, window_params = [{transform_indices = @transform_0, window_bounds = array<i64: 2, 4, 8>}, {transform_indices = @transform_1, window_bounds = array<i64: 2, 8, 8>}]} {
    %c0 = arith.constant 0 : index
    %c0_0 = arith.constant 0 : index
    %c0_1 = arith.constant 0 : index
    %0 = vector.load %arg2[%c0, %c0_0, %c0_1] : memref<2x4x8xf32, #tpu.memory_space<vmem>>, vector<2x4x8xf32>
    %cst = arith.constant 0.000000e+00 : f32
    %1 = vector.broadcast %cst : f32 to vector<2x2x8xf32>
    %c0_2 = arith.constant 0 : index
    %c0_3 = arith.constant 0 : index
    %c0_4 = arith.constant 0 : index
    %2 = vector.load %arg3[%c0_2, %c0_3, %c0_4] : memref<2x8x8xf32, #tpu.memory_space<vmem>>, vector<2x2x8xf32>
    tpu.vector_store %arg3[%c0_2, %c0_3, %c0_4], %1 {strides = array<i32>} : memref<2x8x8xf32, #tpu.memory_space<vmem>>, vector<2x2x8xf32>,
    %c0_5 = arith.constant 0 : index
    %c2 = arith.constant 2 : index
    %c0_6 = arith.constant 0 : index
    %3 = vector.load %arg3[%c0_5, %c2, %c0_6] : memref<2x8x8xf32, #tpu.memory_space<vmem>>, vector<2x4x8xf32>
    tpu.vector_store %arg3[%c0_5, %c2, %c0_6], %0 {strides = array<i32>} : memref<2x8x8xf32, #tpu.memory_space<vmem>>, vector<2x4x8xf32>,
    %c0_7 = arith.constant 0 : index
    %c6 = arith.constant 6 : index
    %c0_8 = arith.constant 0 : index
    %4 = vector.load %arg3[%c0_7, %c6, %c0_8] : memref<2x8x8xf32, #tpu.memory_space<vmem>>, vector<2x2x8xf32>
    tpu.vector_store %arg3[%c0_7, %c6, %c0_8], %1 {strides = array<i32>} : memref<2x8x8xf32, #tpu.memory_space<vmem>>, vector<2x2x8xf32>,
    return
  }
  func.func @transform_0(%arg0: i32, %arg1: i32) -> (i32, i32, i32) {
    %c0_i32 = arith.constant 0 : i32
    %c0_i32_0 = arith.constant 0 : i32
    return %arg0, %c0_i32, %arg1 : i32, i32, i32
  }
  func.func @transform_1(%arg0: i32, %arg1: i32) -> (i32, i32, i32) {
    %c0_i32 = arith.constant 0 : i32
    %c0_i32_0 = arith.constant 0 : i32
    return %arg0, %c0_i32, %arg1 : i32, i32, i32
  }
}

</mosaic_0001>

<bundles_post_ra>
// kernel: tpu_custom_call.1
= control target key start
LH: loop header
LB: loop body
LE: loop exit
PB: predicated region body
PF: predicated region fallthrough
CT: control target
= control target key end

     0   :  { %6 = vsyncpa [#allocation3], 0  ;;  %s146_s0 = inlined_call_operand.hbm [shape: f32[2,4,8], index: 0, kind: input, shape index: {}]   ;;  %s147_s1 = inlined_call_operand.hbm [shape: f32[2,8,8], index: 1, kind: output, shape index: {}]  }
   0x1   :  { %7 = vsyncpa [#allocation4], 0  ;;  %s105_s6 = smov [#allocation2]   ;;  %s57_s10 = scalar_lea.hbm %s146_s0, 128 }
   0x2   :  { %s13_s7 = sshll.u32 %s105_s6, 4  ;;  %p58_p0 = scmp.ne.s32.totalorder %s146_s0, %s57_s10  ;;  %s14_s7 = int_to_ptr.vmem [resolvable:$true] %s13_s7 }
   0x3   :  { %p61_p1 = scmp.lt.u32.totalorder %s57_s10, %s146_s0 }
   0x5   :  { %p63_p2 = pnand %p61_p1, %p58_p0 }
   0x7   :  { %66 = shalt.err (!%p63_p2)
}
   0x8   :  { %s67_s15 = scalar_lea.vmem %s14_s7, 128  ;;  %p72_p4 = scmp.lt.s32.totalorder %s14_s7, %s14_s7 }
   0x9   :  { %p68_p3 = scmp.ne.s32.totalorder %s14_s7, %s67_s15  ;;  %p73_p5 = scmp.lt.s32.totalorder %s67_s15, %s67_s15 }
   0xb   :  { %p74_p6 = por %p73_p5, %p72_p4 }
   0xd   :  { %p75_p7 = pnand %p74_p6, %p68_p3 }
   0xf   :  { %78 = shalt.err (!%p75_p7)
}
  0x10   :  { %s106_s16 = smov 64   ;;  %s107_s17 = smov 4  }
  0x11   :  { %19 = dma.hbm_to_vmem [thread:$0]  %s146_s0, 128, %s14_s7, [#allocation3], %s106_s16, %s106_s16, %s107_s17  }
  0x12   :  { %101 = dma.done.wait [#allocation3], 128  }
  0x13   :  { %102 = vsyncadd [#allocation3], 4294967168  ;;  %vm25_vm0 = vcmask 58368   ;;  %v108_v0 = vmov 0.0   ;;  %s109_s20 = smov [#allocation5]   ;;  %vm28_vm1 = vcmask 60416  }
  0x14   :  { %26 = vst.msk [vmem:[#allocation5] sm:$0x3] %vm25_vm0, %v108_v0  ;;  %27 = vst.msk [vmem:[#allocation5 + $0x8] sm:$0x3] %vm25_vm0, %v108_v0  ;;  %s38_s21 = sshll.u32 %s109_s20, 4  ;;  %s39_s21 = int_to_ptr.vmem [resolvable:$true] %s38_s21 }
  0x15   :  { %31 = vst.msk [vmem:[#allocation5 + $0x6] sm:$0x3] %vm25_vm0, %v108_v0  ;;  %32 = vst.msk [vmem:[#allocation5 + $0xe] sm:$0x3] %vm25_vm0, %v108_v0  ;;  %v23_v1 = vld [vmem:[#allocation2] sm:$0xf]  ;;  %p84_p9 = scmp.lt.s32.totalorder %s39_s21, %s39_s21 }
  0x16   :  { %v24_v2 = vld [vmem:[#allocation2 + $0x4] sm:$0xf]  ;;  %29 = vst.msk [vmem:[#allocation5 + $0x2] sm:$0xf] %vm28_vm1, %v23_v1  ;;  %s79_s22 = scalar_lea.vmem %s39_s21, 256 }
  0x17   :  { %30 = vst.msk [vmem:[#allocation5 + $0xa] sm:$0xf] %vm28_vm1, %v24_v2  ;;  %p80_p8 = scmp.ne.s32.totalorder %s39_s21, %s79_s22  ;;  %p85_p10 = scmp.lt.s32.totalorder %s79_s22, %s79_s22 }
  0x19   :  { %p86_p11 = por %p85_p10, %p84_p9 }
  0x1b   :  { %p87_p12 = pnand %p86_p11, %p80_p8 }
  0x1d   :  { %90 = shalt.err (!%p87_p12)
}
  0x1e   :  { %s91_s24 = scalar_lea.hbm %s147_s1, 256 }
  0x1f   :  { %p92_p13 = scmp.ne.s32.totalorder %s147_s1, %s91_s24  ;;  %p95_p0 = scmp.lt.u32.totalorder %s91_s24, %s147_s1 }
  0x21   :  { %p97_p1 = pnand %p95_p0, %p92_p13 }
  0x23   :  { %100 = shalt.err (!%p97_p1)
}
  0x24   :  { %s110_s29 = smov 128   ;;  %s111_s30 = smov 8  }
  0x25   :  { %44 = dma.vmem_to_hbm [thread:$0]  %s39_s21, 256, %s147_s1, [#allocation4], %s110_s29, %s110_s29, %s111_s30  }
  0x26   :  { %103 = dma.done.wait [#allocation4], 256  }
  0x27   :  { %104 = vsyncadd [#allocation4], 4294967040 }
  0x28   :  { %48 = vsyncpa [#allocation3], 1 }
  0x29   :  { %49 = vsyncpa [#allocation4], 1 }

</bundles_post_ra>
